<compile_context>
chip_gen: v7x
topology: tpu7x:2x2x1
jax: 0.10.0
libtpu: 0.0.40
codegen_flags: <defaults>
</compile_context>

<pallas_src>
import jax
import jax.numpy as jnp
from jax.experimental import pallas as pl
from jax.experimental.pallas import tpu as pltpu

EPS = 1e-5
MATMUL_DTYPE = jnp.bfloat16      # MXU operand dtype (accumulation stays f32)

_CPARAMS = pltpu.CompilerParams(
    dimension_semantics=("parallel",),   # batch tiles shard across v7x's 2 TCs
    # 32 MiB is generation-safe (v7x physical VMEM is only 64 MiB); today's
    # tiles are ~tens of KiB so there is enormous headroom.
    vmem_limit_bytes=32 * 1024 * 1024,
)


# --------------------------------------------------------------------------- #
# Kernels (all operate on the lane-dense (rows, W*C) layout)
# --------------------------------------------------------------------------- #
def _conv_stats_kernel(x_ref, w_ref, y_ref, st_ref, a_ref):
    """3x3 conv (pad=1) over an NB-image tile + per-tile channel stats.

    x_ref : (NB, H, WC) f32 input tile (unpadded)
    w_ref : (3, WC, WC) banded weights (dx taps + W zero-pad folded in)
    y_ref : (NB, H, WC) f32 raw conv output
    st_ref: (1, 2, WC)  f32 [col-sum, col-sum-of-squares] over this tile's rows
    a_ref : (NB*(H+2), WC) scratch: per-image H-padded activations (bf16)
    """
    NB, H, WC = x_ref.shape
    P = H + 2                                        # padded rows per image
    zrow = jnp.zeros((1, WC), a_ref.dtype)

    for i in range(NB):                              # static Python unroll
        base = i * P
        a_ref[base:base + 1, :] = zrow               # top halo
        a_ref[base + P - 1:base + P, :] = zrow       # bottom halo
        a_ref[base + 1:base + 1 + H, :] = x_ref[i].astype(a_ref.dtype)

    # Three dy-tap matmuls over the flattened padded tile: M = NB*(H+2)-2.
    M = NB * P - 2
    acc = jnp.dot(a_ref[0:M, :], w_ref[0], preferred_element_type=jnp.float32)
    for dy in (1, 2):
        acc = acc + jnp.dot(a_ref[dy:dy + M, :], w_ref[dy],
                            preferred_element_type=jnp.float32)

    # Per-image valid rows: store + BN statistics fused into the conv epilogue.
    s = jnp.zeros((1, WC), jnp.float32)
    sq = jnp.zeros((1, WC), jnp.float32)
    for i in range(NB):
        blk = acc[i * P:i * P + H, :]
        y_ref[i, :, :] = blk
        s = s + jnp.sum(blk, axis=0, keepdims=True)
        sq = sq + jnp.sum(blk * blk, axis=0, keepdims=True)
    st_ref[:, 0:1, :] = s.reshape(1, 1, WC)
    st_ref[:, 1:2, :] = sq.reshape(1, 1, WC)


def _bn_relu_conv_stats_kernel(y1_ref, s_ref, t_ref, w_ref, y2_ref, st_ref, a_ref):
    """BN1 affine + ReLU, then conv2 + its BN statistics (NB-image tile).

    y1_ref      : (NB, H, WC) f32 raw conv1 output
    s_ref/t_ref : (1, WC) per-lane BN scale / shift
    w_ref       : (3, WC, WC) banded conv2 weights
    y2_ref      : (NB, H, WC) f32 raw conv2 output
    st_ref      : (1, 2, WC)
    a_ref       : (NB*(H+2), WC) scratch: per-image padded bf16 activations
    """
    NB, H, WC = y1_ref.shape
    P = H + 2
    zrow = jnp.zeros((1, WC), a_ref.dtype)
    scale = s_ref[...]
    shift = t_ref[...]

    for i in range(NB):
        base = i * P
        a_ref[base:base + 1, :] = zrow
        a_ref[base + P - 1:base + P, :] = zrow
        act = jnp.maximum(y1_ref[i] * scale + shift, 0.0)      # f32 BN + ReLU
        a_ref[base + 1:base + 1 + H, :] = act.astype(a_ref.dtype)

    M = NB * P - 2
    acc = jnp.dot(a_ref[0:M, :], w_ref[0], preferred_element_type=jnp.float32)
    for dy in (1, 2):
        acc = acc + jnp.dot(a_ref[dy:dy + M, :], w_ref[dy],
                            preferred_element_type=jnp.float32)

    s = jnp.zeros((1, WC), jnp.float32)
    sq = jnp.zeros((1, WC), jnp.float32)
    for i in range(NB):
        blk = acc[i * P:i * P + H, :]
        y2_ref[i, :, :] = blk
        s = s + jnp.sum(blk, axis=0, keepdims=True)
        sq = sq + jnp.sum(blk * blk, axis=0, keepdims=True)
    st_ref[:, 0:1, :] = s.reshape(1, 1, WC)
    st_ref[:, 1:2, :] = sq.reshape(1, 1, WC)


def _bn_add_relu_kernel(y2_ref, s_ref, t_ref, x_ref, o_ref):
    """BN2 affine + residual add + ReLU (lane-dense elementwise)."""
    NB = y2_ref.shape[0]
    scale = s_ref[...]
    shift = t_ref[...]
    for i in range(NB):
        o_ref[i, :, :] = jnp.maximum(y2_ref[i] * scale + shift + x_ref[i], 0.0)


# --------------------------------------------------------------------------- #
# Wrapper helpers
# --------------------------------------------------------------------------- #
def _make_band(w_hwio, W):
    """(3,3,Cin,Cout) -> (3, W*Cin, W*Cout) block-banded weights.

    band[dy][wi*Cin+ci, wo*Cout+co] = w[dy, wi-wo+1, ci, co] for |wi-wo| <= 1,
    folding the 3 dx taps and the W zero padding into one lane-dense K=W*C
    matmul per dy row tap.
    """
    bands = []
    for dy in range(3):
        b = 0.0
        for dx in range(3):
            b = b + jnp.kron(jnp.eye(W, k=1 - dx, dtype=w_hwio.dtype),
                             w_hwio[dy, dx])
        bands.append(b)
    return jnp.stack(bands, axis=0)


def _bn_lane_affine(stats, gamma, beta, W, C, count):
    """Per-tile stats -> per-channel batch mean/var -> lane-dense scale/shift."""
    tot = jnp.sum(stats, axis=0)                     # (2, W*C)
    ch_sum = tot[0].reshape(W, C).sum(axis=0)        # (C,)
    ch_sq = tot[1].reshape(W, C).sum(axis=0)
    mean = ch_sum / count
    # TODO(synk): E[x^2]-E[x]^2 is cancellation-prone when |mean| >> std; use a
    # shifted / two-pass reduction at real-network scale.
    var = ch_sq / count - mean * mean                # biased var (BN training mode)
    scale_c = gamma * jax.lax.rsqrt(var + EPS)
    shift_c = beta - mean * scale_c
    return jnp.tile(scale_c, W)[None, :], jnp.tile(shift_c, W)[None, :]   # (1, W*C)


def _pick_nb(N, H):
    """Images per grid step: grow M toward 256 MXU rows, keep >=2 grid steps."""
    max_nb = N if N < 2 else N // 2        # >=2 steps so both v7x TCs get work
    target = max(1, 256 // (H + 2))        # M = NB*(H+2)-2 ~ 256 on v6e/v7x
    nb = 1
    for d in range(1, N + 1):
        if N % d == 0 and d <= max_nb and d <= target:
            nb = d
    return nb


def encoder_block_lanedense(x_whc, w1_oihw, g1, b1, w2_oihw, g2, b2, *, W, C):
    """Basic-block forward on lane-dense (N, H, W*C) f32 activations."""
    N, H, WC = x_whc.shape
    assert WC == W * C
    NB = _pick_nb(N, H)
    G = N // NB
    count = float(N * H * W)

    band1 = _make_band(jnp.transpose(w1_oihw, (2, 3, 1, 0)).astype(jnp.float32),
                       W).astype(MATMUL_DTYPE)
    band2 = _make_band(jnp.transpose(w2_oihw, (2, 3, 1, 0)).astype(jnp.float32),
                       W).astype(MATMUL_DTYPE)

    tile_spec = pl.BlockSpec((NB, H, WC), lambda n: (n, 0, 0))
    stat_spec = pl.BlockSpec((1, 2, WC), lambda n: (n, 0, 0))
    band_spec = pl.BlockSpec((3, WC, WC), lambda n: (0, 0, 0))
    lane_spec = pl.BlockSpec((1, WC), lambda n: (0, 0))
    pad_scratch = [pltpu.VMEM((NB * (H + 2), WC), MATMUL_DTYPE)]

    # ---- pass 1: conv1 + BN1 statistics -------------------------------------
    y1, st1 = pl.pallas_call(
        _conv_stats_kernel,
        out_shape=(jax.ShapeDtypeStruct((N, H, WC), jnp.float32),
                   jax.ShapeDtypeStruct((G, 2, WC), jnp.float32)),
        grid=(G,),
        in_specs=[tile_spec, band_spec],
        out_specs=(tile_spec, stat_spec),
        scratch_shapes=pad_scratch,
        compiler_params=_CPARAMS,
    )(x_whc, band1)
    s1, t1 = _bn_lane_affine(st1, g1.astype(jnp.float32), b1.astype(jnp.float32),
                             W, C, count)

    # ---- pass 2: BN1 + ReLU + conv2 + BN2 statistics -------------------------
    y2, st2 = pl.pallas_call(
        _bn_relu_conv_stats_kernel,
        out_shape=(jax.ShapeDtypeStruct((N, H, WC), jnp.float32),
                   jax.ShapeDtypeStruct((G, 2, WC), jnp.float32)),
        grid=(G,),
        in_specs=[tile_spec, lane_spec, lane_spec, band_spec],
        out_specs=(tile_spec, stat_spec),
        scratch_shapes=pad_scratch,
        compiler_params=_CPARAMS,
    )(y1, s1, t1, band2)
    s2, t2 = _bn_lane_affine(st2, g2.astype(jnp.float32), b2.astype(jnp.float32),
                             W, C, count)

    # ---- pass 3: BN2 + residual + ReLU ---------------------------------------
    out = pl.pallas_call(
        _bn_add_relu_kernel,
        out_shape=jax.ShapeDtypeStruct((N, H, WC), jnp.float32),
        grid=(G,),
        in_specs=[tile_spec, lane_spec, lane_spec, tile_spec],
        out_specs=tile_spec,
        compiler_params=_CPARAMS,
    )(y2, s2, t2, x_whc)

    return out


@jax.jit
def encoder_block(x_nchw, w1_oihw, g1, b1, w2_oihw, g2, b2):
    """ResNet basic block forward (stride=1, downsample=None). NCHW in/out.

    The NCHW<->NHWC transposes exist only for PyTorch interface parity; a
    channels-last caller should use encoder_block_lanedense directly.
    """
    x = jnp.transpose(x_nchw, (0, 2, 3, 1)).astype(jnp.float32)       # NHWC
    N, H, W, C = x.shape
    x_whc = x.reshape(N, H, W * C)                                     # lane-dense
    out = encoder_block_lanedense(x_whc, w1_oihw, g1, b1, w2_oihw, g2, b2,
                                  W=W, C=C)
    return jnp.transpose(out.reshape(N, H, W, C), (0, 3, 1, 2))        # NCHW


# --------------------------------------------------------------------------- #
# Plain-JAX reference of the PyTorch forward (training-mode BatchNorm, f32)
# --------------------------------------------------------------------------- #
def reference(x, w1, g1, b1, w2, g2, b2):
    def conv(h, w):
        return jax.lax.conv_general_dilated(
            h, w, window_strides=(1, 1), padding=((1, 1), (1, 1)),
            dimension_numbers=('NCHW', 'OIHW', 'NCHW'))

    def bn(h, g, b):
        mean = jnp.mean(h, axis=(0, 2, 3), keepdims=True)
        var = jnp.mean((h - mean) ** 2, axis=(0, 2, 3), keepdims=True)
        return ((h - mean) * jax.lax.rsqrt(var + EPS)
                * g.reshape(1, -1, 1, 1) + b.reshape(1, -1, 1, 1))

    out = jax.nn.relu(bn(conv(x, w1), g1, b1))
    out = bn(conv(out, w2), g2, b2)
    return jax.nn.relu(out + x)


if __name__ == "__main__":
    N, C, H, W = 2, 8, 16, 16          # inplanes == planes (no downsample), W*C = 128
    key = jax.random.PRNGKey(0)
    k_x, k_w1, k_w2 = jax.random.split(key, 3)

    x = jax.random.normal(k_x, (N, C, H, W), jnp.float32)
    w1 = 0.1 * jax.random.normal(k_w1, (C, C, 3, 3), jnp.float32)  # conv1 weight
    w2 = 0.1 * jax.random.normal(k_w2, (C, C, 3, 3), jnp.float32)  # conv2 weight
    g1 = jnp.ones((C,), jnp.float32)   # bn1 gamma (PyTorch default init)
    b1 = jnp.zeros((C,), jnp.float32)  # bn1 beta
    g2 = jnp.ones((C,), jnp.float32)   # bn2 gamma
    b2 = jnp.zeros((C,), jnp.float32)  # bn2 beta

    out = jax.block_until_ready(encoder_block(x, w1, g1, b1, w2, g2, b2))
    ref = jax.block_until_ready(reference(x, w1, g1, b1, w2, g2, b2))

    assert out.shape == (N, C, H, W)
    # bf16 MXU operands (f32 accumulation) vs. an all-f32 reference: allow a
    # looser tolerance; flip MATMUL_DTYPE to f32 to recover 1e-3 agreement.
    tol = 3e-2 if MATMUL_DTYPE == jnp.bfloat16 else 1e-3
    assert jnp.allclose(out, ref, rtol=tol, atol=tol), \
        f"max abs diff {jnp.max(jnp.abs(out - ref))}"

    print("KERNEL_OK")
</pallas_src>

<mosaic_0001>
module attributes {stable_mosaic.version = 11 : i64} {
  func.func @_conv_stats_kernel(%arg0: i32, %arg1: memref<1x16x128xf32, #tpu.memory_space<vmem>>, %arg2: memref<3x128x128xbf16, #tpu.memory_space<vmem>>, %arg3: memref<1x16x128xf32, #tpu.memory_space<vmem>>, %arg4: memref<1x2x128xf32, #tpu.memory_space<vmem>>, %arg5: memref<18x128xbf16, #tpu.memory_space<vmem>>) attributes {dimension_semantics = [#tpu.dimension_semantics<parallel>], iteration_bounds = array<i64: 2>, scalar_prefetch = 0 : i64, scratch_operands = 1 : i64, tpu.core_type = #tpu.core_type<tc>, window_params = [{transform_indices = @transform_0, window_bounds = array<i64: 1, 16, 128>}, {pipeline_mode = #tpu.pipeline_mode<synchronous>, transform_indices = @transform_1, window_bounds = array<i64: 3, 128, 128>}, {transform_indices = @transform_2, window_bounds = array<i64: 1, 16, 128>}, {transform_indices = @transform_3, window_bounds = array<i64: 1, 2, 128>}]} {
    %cst = arith.constant 0.000000e+00 : bf16
    %0 = vector.broadcast %cst : bf16 to vector<1x128xbf16>
    %c0 = arith.constant 0 : index
    %c0_0 = arith.constant 0 : index
    %1 = vector.load %arg5[%c0, %c0_0] : memref<18x128xbf16, #tpu.memory_space<vmem>>, vector<1x128xbf16>
    tpu.vector_store %arg5[%c0, %c0_0], %0 {strides = array<i32>} : memref<18x128xbf16, #tpu.memory_space<vmem>>, vector<1x128xbf16>,
    %c17 = arith.constant 17 : index
    %c0_1 = arith.constant 0 : index
    %2 = vector.load %arg5[%c17, %c0_1] : memref<18x128xbf16, #tpu.memory_space<vmem>>, vector<1x128xbf16>
    tpu.vector_store %arg5[%c17, %c0_1], %0 {strides = array<i32>} : memref<18x128xbf16, #tpu.memory_space<vmem>>, vector<1x128xbf16>,
    %c0_2 = arith.constant 0 : index
    %c0_3 = arith.constant 0 : index
    %c0_4 = arith.constant 0 : index
    %3 = vector.load %arg1[%c0_2, %c0_3, %c0_4] : memref<1x16x128xf32, #tpu.memory_space<vmem>>, vector<1x16x128xf32>
    %4 = vector.shape_cast %3 : vector<1x16x128xf32> to vector<16x128xf32>
    %5 = arith.truncf %4 : vector<16x128xf32> to vector<16x128xbf16>
    %c1 = arith.constant 1 : index
    %c0_5 = arith.constant 0 : index
    %6 = vector.load %arg5[%c1, %c0_5] : memref<18x128xbf16, #tpu.memory_space<vmem>>, vector<16x128xbf16>
    tpu.vector_store %arg5[%c1, %c0_5], %5 {strides = array<i32>} : memref<18x128xbf16, #tpu.memory_space<vmem>>, vector<16x128xbf16>,
    %c0_6 = arith.constant 0 : index
    %c0_7 = arith.constant 0 : index
    %7 = vector.load %arg5[%c0_6, %c0_7] : memref<18x128xbf16, #tpu.memory_space<vmem>>, vector<16x128xbf16>
    %c0_8 = arith.constant 0 : index
    %c0_9 = arith.constant 0 : index
    %c0_10 = arith.constant 0 : index
    %8 = vector.load %arg2[%c0_8, %c0_9, %c0_10] : memref<3x128x128xbf16, #tpu.memory_space<vmem>>, vector<1x128x128xbf16>
    %9 = vector.shape_cast %8 : vector<1x128x128xbf16> to vector<128x128xbf16>
    %cst_11 = arith.constant dense<0.000000e+00> : vector<16x128xf32>
    %10 = tpu.matmul %7, %9, %cst_11 {dimension_numbers = #tpu.dot_dimension_numbers<[1], [0], [0], [1], [0, 0, 1, 1], [], []>} : vector<16x128xbf16>, vector<128x128xbf16>, vector<16x128xf32> -> vector<16x128xf32>
    %c1_12 = arith.constant 1 : index
    %c0_13 = arith.constant 0 : index
    %11 = vector.load %arg5[%c1_12, %c0_13] : memref<18x128xbf16, #tpu.memory_space<vmem>>, vector<16x128xbf16>
    %c1_14 = arith.constant 1 : index
    %c0_15 = arith.constant 0 : index
    %c0_16 = arith.constant 0 : index
    %12 = vector.load %arg2[%c1_14, %c0_15, %c0_16] : memref<3x128x128xbf16, #tpu.memory_space<vmem>>, vector<1x128x128xbf16>
    %13 = vector.shape_cast %12 : vector<1x128x128xbf16> to vector<128x128xbf16>
    %cst_17 = arith.constant dense<0.000000e+00> : vector<16x128xf32>
    %14 = tpu.matmul %11, %13, %cst_17 {dimension_numbers = #tpu.dot_dimension_numbers<[1], [0], [0], [1], [0, 0, 1, 1], [], []>} : vector<16x128xbf16>, vector<128x128xbf16>, vector<16x128xf32> -> vector<16x128xf32>
    %15 = arith.addf %10, %14 : vector<16x128xf32>
    %c2 = arith.constant 2 : index
    %c0_18 = arith.constant 0 : index
    %16 = vector.load %arg5[%c2, %c0_18] : memref<18x128xbf16, #tpu.memory_space<vmem>>, vector<16x128xbf16>
    %c2_19 = arith.constant 2 : index
    %c0_20 = arith.constant 0 : index
    %c0_21 = arith.constant 0 : index
    %17 = vector.load %arg2[%c2_19, %c0_20, %c0_21] : memref<3x128x128xbf16, #tpu.memory_space<vmem>>, vector<1x128x128xbf16>
    %18 = vector.shape_cast %17 : vector<1x128x128xbf16> to vector<128x128xbf16>
    %cst_22 = arith.constant dense<0.000000e+00> : vector<16x128xf32>
    %19 = tpu.matmul %16, %18, %cst_22 {dimension_numbers = #tpu.dot_dimension_numbers<[1], [0], [0], [1], [0, 0, 1, 1], [], []>} : vector<16x128xbf16>, vector<128x128xbf16>, vector<16x128xf32> -> vector<16x128xf32>
    %20 = arith.addf %15, %19 : vector<16x128xf32>
    %cst_23 = arith.constant 0.000000e+00 : f32
    %21 = vector.broadcast %cst_23 : f32 to vector<1x128xf32>
    %cst_24 = arith.constant 0.000000e+00 : f32
    %22 = vector.broadcast %cst_24 : f32 to vector<1x128xf32>
    %c0_25 = arith.constant 0 : index
    %c0_26 = arith.constant 0 : index
    %c0_27 = arith.constant 0 : index
    %23 = vector.load %arg3[%c0_25, %c0_26, %c0_27] : memref<1x16x128xf32, #tpu.memory_space<vmem>>, vector<1x16x128xf32>
    %24 = vector.shape_cast %23 : vector<1x16x128xf32> to vector<16x128xf32>
    %25 = vector.shape_cast %20 : vector<16x128xf32> to vector<1x16x128xf32>
    tpu.vector_store %arg3[%c0_25, %c0_26, %c0_27], %25 {strides = array<i32>} : memref<1x16x128xf32, #tpu.memory_space<vmem>>, vector<1x16x128xf32>,
    %cst_28 = arith.constant dense<0.000000e+00> : vector<128xf32>
    %26 = vector.multi_reduction <add>, %20, %cst_28 [0] : vector<16x128xf32> to vector<128xf32>
    %27 = vector.shape_cast %26 : vector<128xf32> to vector<1x128xf32>
    %28 = arith.addf %21, %27 : vector<1x128xf32>
    %29 = arith.mulf %20, %20 : vector<16x128xf32>
    %cst_29 = arith.constant dense<0.000000e+00> : vector<128xf32>
    %30 = vector.multi_reduction <add>, %29, %cst_29 [0] : vector<16x128xf32> to vector<128xf32>
    %31 = vector.shape_cast %30 : vector<128xf32> to vector<1x128xf32>
    %32 = arith.addf %22, %31 : vector<1x128xf32>
    %33 = vector.shape_cast %28 : vector<1x128xf32> to vector<1x1x128xf32>
    %c0_30 = arith.constant 0 : index
    %c0_31 = arith.constant 0 : index
    %c0_32 = arith.constant 0 : index
    %34 = vector.load %arg4[%c0_30, %c0_31, %c0_32] : memref<1x2x128xf32, #tpu.memory_space<vmem>>, vector<1x1x128xf32>
    tpu.vector_store %arg4[%c0_30, %c0_31, %c0_32], %33 {strides = array<i32>} : memref<1x2x128xf32, #tpu.memory_space<vmem>>, vector<1x1x128xf32>,
    %35 = vector.shape_cast %32 : vector<1x128xf32> to vector<1x1x128xf32>
    %c0_33 = arith.constant 0 : index
    %c1_34 = arith.constant 1 : index
    %c0_35 = arith.constant 0 : index
    %36 = vector.load %arg4[%c0_33, %c1_34, %c0_35] : memref<1x2x128xf32, #tpu.memory_space<vmem>>, vector<1x1x128xf32>
    tpu.vector_store %arg4[%c0_33, %c1_34, %c0_35], %35 {strides = array<i32>} : memref<1x2x128xf32, #tpu.memory_space<vmem>>, vector<1x1x128xf32>,
    return
  }
  func.func @transform_0(%arg0: i32) -> (i32, i32, i32) {
    %c0_i32 = arith.constant 0 : i32
    %c0_i32_0 = arith.constant 0 : i32
    %c0_i32_1 = arith.constant 0 : i32
    return %arg0, %c0_i32, %c0_i32_0 : i32, i32, i32
  }
  func.func @transform_1(%arg0: i32) -> (i32, i32, i32) {
    %c0_i32 = arith.constant 0 : i32
    %c0_i32_0 = arith.constant 0 : i32
    %c0_i32_1 = arith.constant 0 : i32
    %c0_i32_2 = arith.constant 0 : i32
    return %c0_i32, %c0_i32_0, %c0_i32_1 : i32, i32, i32
  }
  func.func @transform_2(%arg0: i32) -> (i32, i32, i32) {
    %c0_i32 = arith.constant 0 : i32
    %c0_i32_0 = arith.constant 0 : i32
    %c0_i32_1 = arith.constant 0 : i32
    return %arg0, %c0_i32, %c0_i32_0 : i32, i32, i32
  }
  func.func @transform_3(%arg0: i32) -> (i32, i32, i32) {
    %c0_i32 = arith.constant 0 : i32
    %c0_i32_0 = arith.constant 0 : i32
    %c0_i32_1 = arith.constant 0 : i32
    return %arg0, %c0_i32, %c0_i32_0 : i32, i32, i32
  }
}

module attributes {stable_mosaic.version = 11 : i64} {
  func.func @_bn_relu_conv_stats_kernel(%arg0: i32, %arg1: memref<1x16x128xf32, #tpu.memory_space<vmem>>, %arg2: memref<1x128xf32, #tpu.memory_space<vmem>>, %arg3: memref<1x128xf32, #tpu.memory_space<vmem>>, %arg4: memref<3x128x128xbf16, #tpu.memory_space<vmem>>, %arg5: memref<1x16x128xf32, #tpu.memory_space<vmem>>, %arg6: memref<1x2x128xf32, #tpu.memory_space<vmem>>, %arg7: memref<18x128xbf16, #tpu.memory_space<vmem>>) attributes {dimension_semantics = [#tpu.dimension_semantics<parallel>], iteration_bounds = array<i64: 2>, scalar_prefetch = 0 : i64, scratch_operands = 1 : i64, tpu.core_type = #tpu.core_type<tc>, window_params = [{transform_indices = @transform_0, window_bounds = array<i64: 1, 16, 128>}, {pipeline_mode = #tpu.pipeline_mode<synchronous>, transform_indices = @transform_1, window_bounds = array<i64: 1, 128>}, {pipeline_mode = #tpu.pipeline_mode<synchronous>, transform_indices = @transform_2, window_bounds = array<i64: 1, 128>}, {pipeline_mode = #tpu.pipeline_mode<synchronous>, transform_indices = @transform_3, window_bounds = array<i64: 3, 128, 128>}, {transform_indices = @transform_4, window_bounds = array<i64: 1, 16, 128>}, {transform_indices = @transform_5, window_bounds = array<i64: 1, 2, 128>}]} {
    %cst = arith.constant 0.000000e+00 : bf16
    %0 = vector.broadcast %cst : bf16 to vector<1x128xbf16>
    %c0 = arith.constant 0 : index
    %c0_0 = arith.constant 0 : index
    %1 = vector.load %arg2[%c0, %c0_0] : memref<1x128xf32, #tpu.memory_space<vmem>>, vector<1x128xf32>
    %c0_1 = arith.constant 0 : index
    %c0_2 = arith.constant 0 : index
    %2 = vector.load %arg3[%c0_1, %c0_2] : memref<1x128xf32, #tpu.memory_space<vmem>>, vector<1x128xf32>
    %c0_3 = arith.constant 0 : index
    %c0_4 = arith.constant 0 : index
    %3 = vector.load %arg7[%c0_3, %c0_4] : memref<18x128xbf16, #tpu.memory_space<vmem>>, vector<1x128xbf16>
    tpu.vector_store %arg7[%c0_3, %c0_4], %0 {strides = array<i32>} : memref<18x128xbf16, #tpu.memory_space<vmem>>, vector<1x128xbf16>,
    %c17 = arith.constant 17 : index
    %c0_5 = arith.constant 0 : index
    %4 = vector.load %arg7[%c17, %c0_5] : memref<18x128xbf16, #tpu.memory_space<vmem>>, vector<1x128xbf16>
    tpu.vector_store %arg7[%c17, %c0_5], %0 {strides = array<i32>} : memref<18x128xbf16, #tpu.memory_space<vmem>>, vector<1x128xbf16>,
    %c0_6 = arith.constant 0 : index
    %c0_7 = arith.constant 0 : index
    %c0_8 = arith.constant 0 : index
    %5 = vector.load %arg1[%c0_6, %c0_7, %c0_8] : memref<1x16x128xf32, #tpu.memory_space<vmem>>, vector<1x16x128xf32>
    %6 = vector.shape_cast %5 : vector<1x16x128xf32> to vector<16x128xf32>
    %7 = vector.broadcast %1 : vector<1x128xf32> to vector<16x128xf32>
    %8 = arith.mulf %6, %7 : vector<16x128xf32>
    %9 = vector.broadcast %2 : vector<1x128xf32> to vector<16x128xf32>
    %10 = arith.addf %8, %9 : vector<16x128xf32>
    %cst_9 = arith.constant 0.000000e+00 : f32
    %11 = vector.broadcast %cst_9 : f32 to vector<16x128xf32>
    %12 = arith.maximumf %10, %11 : vector<16x128xf32>
    %13 = arith.truncf %12 : vector<16x128xf32> to vector<16x128xbf16>
    %c1 = arith.constant 1 : index
    %c0_10 = arith.constant 0 : index
    %14 = vector.load %arg7[%c1, %c0_10] : memref<18x128xbf16, #tpu.memory_space<vmem>>, vector<16x128xbf16>
    tpu.vector_store %arg7[%c1, %c0_10], %13 {strides = array<i32>} : memref<18x128xbf16, #tpu.memory_space<vmem>>, vector<16x128xbf16>,
    %c0_11 = arith.constant 0 : index
    %c0_12 = arith.constant 0 : index
    %15 = vector.load %arg7[%c0_11, %c0_12] : memref<18x128xbf16, #tpu.memory_space<vmem>>, vector<16x128xbf16>
    %c0_13 = arith.constant 0 : index
    %c0_14 = arith.constant 0 : index
    %c0_15 = arith.constant 0 : index
    %16 = vector.load %arg4[%c0_13, %c0_14, %c0_15] : memref<3x128x128xbf16, #tpu.memory_space<vmem>>, vector<1x128x128xbf16>
    %17 = vector.shape_cast %16 : vector<1x128x128xbf16> to vector<128x128xbf16>
    %cst_16 = arith.constant dense<0.000000e+00> : vector<16x128xf32>
    %18 = tpu.matmul %15, %17, %cst_16 {dimension_numbers = #tpu.dot_dimension_numbers<[1], [0], [0], [1], [0, 0, 1, 1], [], []>} : vector<16x128xbf16>, vector<128x128xbf16>, vector<16x128xf32> -> vector<16x128xf32>
    %c1_17 = arith.constant 1 : index
    %c0_18 = arith.constant 0 : index
    %19 = vector.load %arg7[%c1_17, %c0_18] : memref<18x128xbf16, #tpu.memory_space<vmem>>, vector<16x128xbf16>
    %c1_19 = arith.constant 1 : index
    %c0_20 = arith.constant 0 : index
    %c0_21 = arith.constant 0 : index
    %20 = vector.load %arg4[%c1_19, %c0_20, %c0_21] : memref<3x128x128xbf16, #tpu.memory_space<vmem>>, vector<1x128x128xbf16>
    %21 = vector.shape_cast %20 : vector<1x128x128xbf16> to vector<128x128xbf16>
    %cst_22 = arith.constant dense<0.000000e+00> : vector<16x128xf32>
    %22 = tpu.matmul %19, %21, %cst_22 {dimension_numbers = #tpu.dot_dimension_numbers<[1], [0], [0], [1], [0, 0, 1, 1], [], []>} : vector<16x128xbf16>, vector<128x128xbf16>, vector<16x128xf32> -> vector<16x128xf32>
    %23 = arith.addf %18, %22 : vector<16x128xf32>
    %c2 = arith.constant 2 : index
    %c0_23 = arith.constant 0 : index
    %24 = vector.load %arg7[%c2, %c0_23] : memref<18x128xbf16, #tpu.memory_space<vmem>>, vector<16x128xbf16>
    %c2_24 = arith.constant 2 : index
    %c0_25 = arith.constant 0 : index
    %c0_26 = arith.constant 0 : index
    %25 = vector.load %arg4[%c2_24, %c0_25, %c0_26] : memref<3x128x128xbf16, #tpu.memory_space<vmem>>, vector<1x128x128xbf16>
    %26 = vector.shape_cast %25 : vector<1x128x128xbf16> to vector<128x128xbf16>
    %cst_27 = arith.constant dense<0.000000e+00> : vector<16x128xf32>
    %27 = tpu.matmul %24, %26, %cst_27 {dimension_numbers = #tpu.dot_dimension_numbers<[1], [0], [0], [1], [0, 0, 1, 1], [], []>} : vector<16x128xbf16>, vector<128x128xbf16>, vector<16x128xf32> -> vector<16x128xf32>
    %28 = arith.addf %23, %27 : vector<16x128xf32>
    %cst_28 = arith.constant 0.000000e+00 : f32
    %29 = vector.broadcast %cst_28 : f32 to vector<1x128xf32>
    %cst_29 = arith.constant 0.000000e+00 : f32
    %30 = vector.broadcast %cst_29 : f32 to vector<1x128xf32>
    %c0_30 = arith.constant 0 : index
    %c0_31 = arith.constant 0 : index
    %c0_32 = arith.constant 0 : index
    %31 = vector.load %arg5[%c0_30, %c0_31, %c0_32] : memref<1x16x128xf32, #tpu.memory_space<vmem>>, vector<1x16x128xf32>
    %32 = vector.shape_cast %31 : vector<1x16x128xf32> to vector<16x128xf32>
    %33 = vector.shape_cast %28 : vector<16x128xf32> to vector<1x16x128xf32>
    tpu.vector_store %arg5[%c0_30, %c0_31, %c0_32], %33 {strides = array<i32>} : memref<1x16x128xf32, #tpu.memory_space<vmem>>, vector<1x16x128xf32>,
    %cst_33 = arith.constant dense<0.000000e+00> : vector<128xf32>
    %34 = vector.multi_reduction <add>, %28, %cst_33 [0] : vector<16x128xf32> to vector<128xf32>
    %35 = vector.shape_cast %34 : vector<128xf32> to vector<1x128xf32>
    %36 = arith.addf %29, %35 : vector<1x128xf32>
    %37 = arith.mulf %28, %28 : vector<16x128xf32>
    %cst_34 = arith.constant dense<0.000000e+00> : vector<128xf32>
    %38 = vector.multi_reduction <add>, %37, %cst_34 [0] : vector<16x128xf32> to vector<128xf32>
    %39 = vector.shape_cast %38 : vector<128xf32> to vector<1x128xf32>
    %40 = arith.addf %30, %39 : vector<1x128xf32>
    %41 = vector.shape_cast %36 : vector<1x128xf32> to vector<1x1x128xf32>
    %c0_35 = arith.constant 0 : index
    %c0_36 = arith.constant 0 : index
    %c0_37 = arith.constant 0 : index
    %42 = vector.load %arg6[%c0_35, %c0_36, %c0_37] : memref<1x2x128xf32, #tpu.memory_space<vmem>>, vector<1x1x128xf32>
    tpu.vector_store %arg6[%c0_35, %c0_36, %c0_37], %41 {strides = array<i32>} : memref<1x2x128xf32, #tpu.memory_space<vmem>>, vector<1x1x128xf32>,
    %43 = vector.shape_cast %40 : vector<1x128xf32> to vector<1x1x128xf32>
    %c0_38 = arith.constant 0 : index
    %c1_39 = arith.constant 1 : index
    %c0_40 = arith.constant 0 : index
    %44 = vector.load %arg6[%c0_38, %c1_39, %c0_40] : memref<1x2x128xf32, #tpu.memory_space<vmem>>, vector<1x1x128xf32>
    tpu.vector_store %arg6[%c0_38, %c1_39, %c0_40], %43 {strides = array<i32>} : memref<1x2x128xf32, #tpu.memory_space<vmem>>, vector<1x1x128xf32>,
    return
  }
  func.func @transform_0(%arg0: i32) -> (i32, i32, i32) {
    %c0_i32 = arith.constant 0 : i32
    %c0_i32_0 = arith.constant 0 : i32
    %c0_i32_1 = arith.constant 0 : i32
    return %arg0, %c0_i32, %c0_i32_0 : i32, i32, i32
  }
  func.func @transform_1(%arg0: i32) -> (i32, i32) {
    %c0_i32 = arith.constant 0 : i32
    %c0_i32_0 = arith.constant 0 : i32
    %c0_i32_1 = arith.constant 0 : i32
    return %c0_i32, %c0_i32_0 : i32, i32
  }
  func.func @transform_2(%arg0: i32) -> (i32, i32) {
    %c0_i32 = arith.constant 0 : i32
    %c0_i32_0 = arith.constant 0 : i32
    %c0_i32_1 = arith.constant 0 : i32
    return %c0_i32, %c0_i32_0 : i32, i32
  }
  func.func @transform_3(%arg0: i32) -> (i32, i32, i32) {
    %c0_i32 = arith.constant 0 : i32
    %c0_i32_0 = arith.constant 0 : i32
    %c0_i32_1 = arith.constant 0 : i32
    %c0_i32_2 = arith.constant 0 : i32
    return %c0_i32, %c0_i32_0, %c0_i32_1 : i32, i32, i32
  }
  func.func @transform_4(%arg0: i32) -> (i32, i32, i32) {
    %c0_i32 = arith.constant 0 : i32
    %c0_i32_0 = arith.constant 0 : i32
    %c0_i32_1 = arith.constant 0 : i32
    return %arg0, %c0_i32, %c0_i32_0 : i32, i32, i32
  }
  func.func @transform_5(%arg0: i32) -> (i32, i32, i32) {
    %c0_i32 = arith.constant 0 : i32
    %c0_i32_0 = arith.constant 0 : i32
    %c0_i32_1 = arith.constant 0 : i32
    return %arg0, %c0_i32, %c0_i32_0 : i32, i32, i32
  }
}

module attributes {stable_mosaic.version = 11 : i64} {
  func.func @_bn_add_relu_kernel(%arg0: i32, %arg1: memref<1x16x128xf32, #tpu.memory_space<vmem>>, %arg2: memref<1x128xf32, #tpu.memory_space<vmem>>, %arg3: memref<1x128xf32, #tpu.memory_space<vmem>>, %arg4: memref<1x16x128xf32, #tpu.memory_space<vmem>>, %arg5: memref<1x16x128xf32, #tpu.memory_space<vmem>>) attributes {dimension_semantics = [#tpu.dimension_semantics<parallel>], iteration_bounds = array<i64: 2>, scalar_prefetch = 0 : i64, scratch_operands = 0 : i64, tpu.core_type = #tpu.core_type<tc>, window_params = [{transform_indices = @transform_0, window_bounds = array<i64: 1, 16, 128>}, {pipeline_mode = #tpu.pipeline_mode<synchronous>, transform_indices = @transform_1, window_bounds = array<i64: 1, 128>}, {pipeline_mode = #tpu.pipeline_mode<synchronous>, transform_indices = @transform_2, window_bounds = array<i64: 1, 128>}, {transform_indices = @transform_3, window_bounds = array<i64: 1, 16, 128>}, {transform_indices = @transform_4, window_bounds = array<i64: 1, 16, 128>}]} {
    %c0 = arith.constant 0 : index
    %c0_0 = arith.constant 0 : index
    %0 = vector.load %arg2[%c0, %c0_0] : memref<1x128xf32, #tpu.memory_space<vmem>>, vector<1x128xf32>
    %c0_1 = arith.constant 0 : index
    %c0_2 = arith.constant 0 : index
    %1 = vector.load %arg3[%c0_1, %c0_2] : memref<1x128xf32, #tpu.memory_space<vmem>>, vector<1x128xf32>
    %c0_3 = arith.constant 0 : index
    %c0_4 = arith.constant 0 : index
    %c0_5 = arith.constant 0 : index
    %2 = vector.load %arg1[%c0_3, %c0_4, %c0_5] : memref<1x16x128xf32, #tpu.memory_space<vmem>>, vector<1x16x128xf32>
    %3 = vector.shape_cast %2 : vector<1x16x128xf32> to vector<16x128xf32>
    %4 = vector.broadcast %0 : vector<1x128xf32> to vector<16x128xf32>
    %5 = arith.mulf %3, %4 : vector<16x128xf32>
    %6 = vector.broadcast %1 : vector<1x128xf32> to vector<16x128xf32>
    %7 = arith.addf %5, %6 : vector<16x128xf32>
    %c0_6 = arith.constant 0 : index
    %c0_7 = arith.constant 0 : index
    %c0_8 = arith.constant 0 : index
    %8 = vector.load %arg4[%c0_6, %c0_7, %c0_8] : memref<1x16x128xf32, #tpu.memory_space<vmem>>, vector<1x16x128xf32>
    %9 = vector.shape_cast %8 : vector<1x16x128xf32> to vector<16x128xf32>
    %10 = arith.addf %7, %9 : vector<16x128xf32>
    %cst = arith.constant 0.000000e+00 : f32
    %11 = vector.broadcast %cst : f32 to vector<16x128xf32>
    %12 = arith.maximumf %10, %11 : vector<16x128xf32>
    %c0_9 = arith.constant 0 : index
    %c0_10 = arith.constant 0 : index
    %c0_11 = arith.constant 0 : index
    %13 = vector.load %arg5[%c0_9, %c0_10, %c0_11] : memref<1x16x128xf32, #tpu.memory_space<vmem>>, vector<1x16x128xf32>
    %14 = vector.shape_cast %13 : vector<1x16x128xf32> to vector<16x128xf32>
    %15 = vector.shape_cast %12 : vector<16x128xf32> to vector<1x16x128xf32>
    tpu.vector_store %arg5[%c0_9, %c0_10, %c0_11], %15 {strides = array<i32>} : memref<1x16x128xf32, #tpu.memory_space<vmem>>, vector<1x16x128xf32>,
    return
  }
  func.func @transform_0(%arg0: i32) -> (i32, i32, i32) {
    %c0_i32 = arith.constant 0 : i32
    %c0_i32_0 = arith.constant 0 : i32
    %c0_i32_1 = arith.constant 0 : i32
    return %arg0, %c0_i32, %c0_i32_0 : i32, i32, i32
  }
  func.func @transform_1(%arg0: i32) -> (i32, i32) {
    %c0_i32 = arith.constant 0 : i32
    %c0_i32_0 = arith.constant 0 : i32
    %c0_i32_1 = arith.constant 0 : i32
    return %c0_i32, %c0_i32_0 : i32, i32
  }
  func.func @transform_2(%arg0: i32) -> (i32, i32) {
    %c0_i32 = arith.constant 0 : i32
    %c0_i32_0 = arith.constant 0 : i32
    %c0_i32_1 = arith.constant 0 : i32
    return %c0_i32, %c0_i32_0 : i32, i32
  }
  func.func @transform_3(%arg0: i32) -> (i32, i32, i32) {
    %c0_i32 = arith.constant 0 : i32
    %c0_i32_0 = arith.constant 0 : i32
    %c0_i32_1 = arith.constant 0 : i32
    return %arg0, %c0_i32, %c0_i32_0 : i32, i32, i32
  }
  func.func @transform_4(%arg0: i32) -> (i32, i32, i32) {
    %c0_i32 = arith.constant 0 : i32
    %c0_i32_0 = arith.constant 0 : i32
    %c0_i32_1 = arith.constant 0 : i32
    return %arg0, %c0_i32, %c0_i32_0 : i32, i32, i32
  }
}

</mosaic_0001>

<bundles_post_ra>
// kernel: squeeze.40
= control target key start
LH: loop header
LB: loop body
LE: loop exit
PB: predicated region body
PF: predicated region fallthrough
CT: control target
= control target key end

     0   :  { %s130_s8 = smov 104   ;;  %s131_s9 = smov 112   ;;  %vm7_vm0 = vcmask 64512   ;;  %s221_s0 = inlined_call_operand.vmem [shape: f32[128], index: 0, kind: input, shape index: {}]   ;;  %s222_s1 = inlined_call_operand.vmem [shape: f32[16,8], index: 1, kind: output, shape index: {}]  }
   0x1   :  { %v4_v0 = vld [vmem:[%s221_s0] sm:$0x1]  ;;  %s129_s0 = smov 120   ;;  %s132_s10 = smov 96  }
   0x2   :  { %5 = vst [vmem:[#allocation0] sm:$0x1] %v4_v0  ;;  %s133_s11 = smov 88   ;;  %s134_s12 = smov 80  }
   0x3   :  { %s135_s13 = smov 72   ;;  %s136_s14 = smov 64  }
   0x4   :  { %s137_s17 = smov 56   ;;  %s138_s18 = smov 48  }
   0x5   :  { %s139_s19 = smov 40   ;;  %s140_s20 = smov 32  }
   0x6   :  { %s141_s21 = smov 24   ;;  %s142_s22 = smov 16  }
   0x7   :  { %s143_s23 = smov 8  }
   0x9   :  { %v9_v1 = vld [vmem:[#allocation0] sm:$0x1]  }
   0xa   :  { %v21_v2 = vld [vmem:[#allocation0] sm:$0x1]   ;;  %10 = vrot.lane.b32.xlu0 %v9_v1, %s129_s0 }
   0xb   :  { %22 = vrot.lane.b32.xlu1 %v21_v2, %s130_s8  ;;  %v15_v3 = vld [vmem:[#allocation0] sm:$0x1]  }
   0xc   :  { %v27_v4 = vld [vmem:[#allocation0] sm:$0x1]  }
   0xd   :  { %v33_v5 = vld [vmem:[#allocation0] sm:$0x1]  }
   0xe   :  { %16 = vrot.lane.b32.xlu0 %v15_v3, %s131_s9  ;;  %v39_v6 = vld [vmem:[#allocation0] sm:$0x1]  }
   0xf   :  { %28 = vrot.lane.b32.xlu1 %v27_v4, %s132_s10  ;;  %v45_v7 = vld [vmem:[#allocation0] sm:$0x1]  }
  0x10   :  { %v51_v8 = vld [vmem:[#allocation0] sm:$0x1]  }
  0x11   :  { %v57_v9 = vld [vmem:[#allocation0] sm:$0x1]  }
  0x12   :  { %34 = vrot.lane.b32.xlu0 %v33_v5, %s133_s11  ;;  %v63_v10 = vld [vmem:[#allocation0] sm:$0x1]  }
  0x13   :  { %40 = vrot.lane.b32.xlu1 %v39_v6, %s134_s12  ;;  %v6_v11 = vld [vmem:[#allocation0] sm:$0x1]  }
  0x14   :  { %8 = vst.msk [vmem:[%s222_s1] sm:$0x1] %vm7_vm0, %v6_v11   ;;  %v69_v12 = vld [vmem:[#allocation0] sm:$0x1]  }
  0x15   :  { %v75_v13 = vld [vmem:[#allocation0] sm:$0x1]  }
  0x16   :  { %46 = vrot.lane.b32.xlu0 %v45_v7, %s135_s13  ;;  %v81_v14 = vld [vmem:[#allocation0] sm:$0x1]  }
  0x17   :  { %52 = vrot.lane.b32.xlu1 %v51_v8, %s136_s14  ;;  %v87_v15 = vld [vmem:[#allocation0] sm:$0x1]  }
  0x18   :  { %v93_v16 = vld [vmem:[#allocation0] sm:$0x1]  }
  0x1a   :  { %58 = vrot.lane.b32.xlu0 %v57_v9, %s137_s17 }
  0x1b   :  { %64 = vrot.lane.b32.xlu1 %v63_v10, %s138_s18 }
  0x1e   :  { %70 = vrot.lane.b32.xlu0 %v69_v12, %s139_s19 }
  0x1f   :  { %76 = vrot.lane.b32.xlu1 %v75_v13, %s140_s20 }
  0x22   :  { %82 = vrot.lane.b32.xlu0 %v81_v14, %s141_s21 }
  0x23   :  { %88 = vrot.lane.b32.xlu1 %v87_v15, %s142_s22 }
  0x26   :  { %94 = vrot.lane.b32.xlu0 %v93_v16, %s143_s23 }
  0x7c   :  { %v11_v17 = vpop.permute.xlu0 %10  }
  0x7d   :  { %v23_v18 = vpop.permute.xlu1 %22   ;;  %99 = vst.msk [vmem:[%s222_s1 + $0x1] sm:$0x1] %vm7_vm0, %v11_v17  }
  0x7e   :  { %101 = vst.msk [vmem:[%s222_s1 + $0x3] sm:$0x1] %vm7_vm0, %v23_v18  }
  0x80   :  { %v17_v19 = vpop.permute.xlu0 %16  }
  0x81   :  { %v29_v20 = vpop.permute.xlu1 %28   ;;  %100 = vst.msk [vmem:[%s222_s1 + $0x2] sm:$0x1] %vm7_vm0, %v17_v19  }
  0x82   :  { %102 = vst.msk [vmem:[%s222_s1 + $0x4] sm:$0x1] %vm7_vm0, %v29_v20  }
  0x84   :  { %v35_v21 = vpop.permute.xlu0 %34  }
  0x85   :  { %v41_v22 = vpop.permute.xlu1 %40   ;;  %103 = vst.msk [vmem:[%s222_s1 + $0x5] sm:$0x1] %vm7_vm0, %v35_v21  }
  0x86   :  { %104 = vst.msk [vmem:[%s222_s1 + $0x6] sm:$0x1] %vm7_vm0, %v41_v22  }
  0x88   :  { %v47_v23 = vpop.permute.xlu0 %46  }
  0x89   :  { %v53_v24 = vpop.permute.xlu1 %52   ;;  %105 = vst.msk [vmem:[%s222_s1 + $0x7] sm:$0x1] %vm7_vm0, %v47_v23  }
  0x8a   :  { %106 = vst.msk [vmem:[%s222_s1 + $0x8] sm:$0x1] %vm7_vm0, %v53_v24  }
  0x8c   :  { %v59_v25 = vpop.permute.xlu0 %58  }
  0x8d   :  { %v65_v26 = vpop.permute.xlu1 %64   ;;  %107 = vst.msk [vmem:[%s222_s1 + $0x9] sm:$0x1] %vm7_vm0, %v59_v25  }
  0x8e   :  { %108 = vst.msk [vmem:[%s222_s1 + $0xa] sm:$0x1] %vm7_vm0, %v65_v26  }
  0x90   :  { %v71_v27 = vpop.permute.xlu0 %70  }
  0x91   :  { %v77_v28 = vpop.permute.xlu1 %76   ;;  %109 = vst.msk [vmem:[%s222_s1 + $0xb] sm:$0x1] %vm7_vm0, %v71_v27  }
  0x92   :  { %110 = vst.msk [vmem:[%s222_s1 + $0xc] sm:$0x1] %vm7_vm0, %v77_v28  }
  0x94   :  { %v83_v29 = vpop.permute.xlu0 %82  }
  0x95   :  { %v89_v30 = vpop.permute.xlu1 %88   ;;  %111 = vst.msk [vmem:[%s222_s1 + $0xd] sm:$0x1] %vm7_vm0, %v83_v29  }
  0x96   :  { %112 = vst.msk [vmem:[%s222_s1 + $0xe] sm:$0x1] %vm7_vm0, %v89_v30  }
  0x98   :  { %v95_v31 = vpop.permute.xlu0 %94  }
  0x99   :  { %113 = vst.msk [vmem:[%s222_s1 + $0xf] sm:$0x1] %vm7_vm0, %v95_v31  }

// kernel: tile.23
= control target key start
LH: loop header
LB: loop body
LE: loop exit
PB: predicated region body
PF: predicated region fallthrough
CT: control target
= control target key end

     0   :  { %s28_s0 = inlined_call_operand.vmem [shape: f32[8], index: 0, kind: input, shape index: {}]   ;;  %s29_s1 = inlined_call_operand.vmem [shape: f32[16,8], index: 1, kind: output, shape index: {}]  }
   0x1   :  { %v4_v0 = vld [vmem:[%s28_s0] ss:$0 sm:$0xff] }
   0x2   :  { %5 = vst [vmem:[%s29_s1] sm:$0xff] %v4_v0  ;;  %8 = vst [vmem:[%s29_s1 + $0x8] sm:$0xff] %v4_v0 }

// kernel: tile.24
= control target key start
LH: loop header
LB: loop body
LE: loop exit
PB: predicated region body
PF: predicated region fallthrough
CT: control target
= control target key end

     0   :  { %s131_s10 = smov 120   ;;  %s132_s11 = smov 104   ;;  %vm3_vm0 = vcmask 64512   ;;  %vm9_vm1 = vcmask 1048512   ;;  %vm15_vm2 = vcmask 982912   ;;  %vm21_vm3 = vcmask 917312   ;;  %s207_s0 = inlined_call_operand.vmem [shape: f32[16,8], index: 0, kind: input, shape index: {}]   ;;  %s208_s1 = inlined_call_operand.vmem [shape: f32[1,128], index: 1, kind: output, shape index: {}]  }
   0x1   :  { %v101_v0 = vld [vmem:[%s207_s0 + $0xf] sm:$0x1]   ;;  %v103_v1 = vld [vmem:[%s207_s0 + $0xd] sm:$0x1]   ;;  %v102_v2 = vld [vmem:[%s207_s0 + $0xe] sm:$0x1]  }
   0x2   :  { %7 = vrot.lane.b32.xlu0 %v101_v0, %s131_s10  ;;  %19 = vrot.lane.b32.xlu1 %v103_v1, %s132_s11  ;;  %v104_v3 = vld [vmem:[%s207_s0 + $0xc] sm:$0x1]   ;;  %s133_s16 = smov 112   ;;  %s134_s17 = smov 96   ;;  %v105_v4 = vld [vmem:[%s207_s0 + $0xb] sm:$0x1]  }
   0x3   :  { %v106_v5 = vld [vmem:[%s207_s0 + $0xa] sm:$0x1]   ;;  %v2_v6 = vld [vmem:[%s207_s0] sm:$0x1]   ;;  %s135_s24 = smov 88   ;;  %s136_s25 = smov 80  }
   0x4   :  { %4 = vst.msk [vmem:[#allocation0] sm:$0x1] %vm3_vm0, %v2_v6   ;;  %v107_v7 = vld [vmem:[%s207_s0 + $0x9] sm:$0x1]   ;;  %v108_v8 = vld [vmem:[%s207_s0 + $0x8] sm:$0x1]  }
   0x5   :  { %s137_s30 = smov 72   ;;  %s138_s2 = smov 64   ;;  %v109_v9 = vld [vmem:[%s207_s0 + $0x7] sm:$0x1]   ;;  %v110_v10 = vld [vmem:[%s207_s0 + $0x6] sm:$0x1]  }
   0x6   :  { %13 = vrot.lane.b32.xlu0 %v102_v2, %s133_s16  ;;  %25 = vrot.lane.b32.xlu1 %v104_v3, %s134_s17  ;;  %s139_s7 = smov 56   ;;  %s140_s8 = smov 48   ;;  %v111_v11 = vld [vmem:[%s207_s0 + $0x5] sm:$0x1]   ;;  %v112_v12 = vld [vmem:[%s207_s0 + $0x4] sm:$0x1]  }
   0x7   :  { %s141_s13 = smov 40   ;;  %s142_s14 = smov 32   ;;  %v113_v13 = vld [vmem:[%s207_s0 + $0x3] sm:$0x1]   ;;  %v114_v14 = vld [vmem:[%s207_s0 + $0x2] sm:$0x1]  }
   0x8   :  { %s143_s19 = smov 24   ;;  %s144_s20 = smov 16   ;;  %v115_v15 = vld [vmem:[%s207_s0 + $0x1] sm:$0x1]   ;;  %vm27_vm4 = vcmask 851712   ;;  %vm33_vm5 = vcmask 786112  }
   0x9   :  { %s145_s0 = smov 8   ;;  %vm39_vm6 = vcmask 720512   ;;  %vm45_vm7 = vcmask 654912   ;;  %vm51_vm8 = vcmask 589312   ;;  %vm57_vm9 = vcmask 523712  }
   0xa   :  { %31 = vrot.lane.b32.xlu0 %v105_v4, %s135_s24  ;;  %37 = vrot.lane.b32.xlu1 %v106_v5, %s136_s25  ;;  %vm63_vm10 = vcmask 458112   ;;  %vm69_vm11 = vcmask 392512   ;;  %vm75_vm12 = vcmask 326912   ;;  %vm81_vm13 = vcmask 261312  }
   0xb   :  { %vm87_vm14 = vcmask 195712   ;;  %vm93_vm15 = vcmask 130112  }
   0xe   :  { %43 = vrot.lane.b32.xlu0 %v107_v7, %s137_s30  ;;  %49 = vrot.lane.b32.xlu1 %v108_v8, %s138_s2 }
  0x12   :  { %55 = vrot.lane.b32.xlu0 %v109_v9, %s139_s7  ;;  %61 = vrot.lane.b32.xlu1 %v110_v10, %s140_s8 }
  0x16   :  { %67 = vrot.lane.b32.xlu0 %v111_v11, %s141_s13  ;;  %73 = vrot.lane.b32.xlu1 %v112_v12, %s142_s14 }
  0x1a   :  { %79 = vrot.lane.b32.xlu0 %v113_v13, %s143_s19  ;;  %85 = vrot.lane.b32.xlu1 %v114_v14, %s144_s20 }
  0x1e   :  { %91 = vrot.lane.b32.xlu0 %v115_v15, %s145_s0 }
  0x74   :  { %v8_v16 = vpop.permute.xlu0 %7   ;;  %v20_v17 = vpop.permute.xlu1 %19  }
  0x75   :  { %10 = vst.msk [vmem:[#allocation0] sm:$0x1] %vm9_vm1, %v8_v16  }
  0x78   :  { %v14_v18 = vpop.permute.xlu0 %13   ;;  %v26_v19 = vpop.permute.xlu1 %25  }
  0x79   :  { %16 = vst.msk [vmem:[#allocation0] sm:$0x1] %vm15_vm2, %v14_v18  }
  0x7a   :  { %22 = vst.msk [vmem:[#allocation0] sm:$0x1] %vm21_vm3, %v20_v17  }
  0x7b   :  { %28 = vst.msk [vmem:[#allocation0] sm:$0x1] %vm27_vm4, %v26_v19  }
  0x7c   :  { %v32_v20 = vpop.permute.xlu0 %31   ;;  %v38_v21 = vpop.permute.xlu1 %37  }
  0x7d   :  { %34 = vst.msk [vmem:[#allocation0] sm:$0x1] %vm33_vm5, %v32_v20  }
  0x7e   :  { %40 = vst.msk [vmem:[#allocation0] sm:$0x1] %vm39_vm6, %v38_v21  }
  0x80   :  { %v44_v22 = vpop.permute.xlu0 %43   ;;  %v50_v23 = vpop.permute.xlu1 %49  }
  0x81   :  { %46 = vst.msk [vmem:[#allocation0] sm:$0x1] %vm45_vm7, %v44_v22  }
  0x82   :  { %52 = vst.msk [vmem:[#allocation0] sm:$0x1] %vm51_vm8, %v50_v23  }
  0x84   :  { %v56_v24 = vpop.permute.xlu0 %55   ;;  %v62_v25 = vpop.permute.xlu1 %61  }
  0x85   :  { %58 = vst.msk [vmem:[#allocation0] sm:$0x1] %vm57_vm9, %v56_v24  }
  0x86   :  { %64 = vst.msk [vmem:[#allocation0] sm:$0x1] %vm63_vm10, %v62_v25  }
  0x88   :  { %v68_v26 = vpop.permute.xlu0 %67   ;;  %v74_v27 = vpop.permute.xlu1 %73  }
  0x89   :  { %70 = vst.msk [vmem:[#allocation0] sm:$0x1] %vm69_vm11, %v68_v26  }
  0x8a   :  { %76 = vst.msk [vmem:[#allocation0] sm:$0x1] %vm75_vm12, %v74_v27  }
  0x8c   :  { %v80_v28 = vpop.permute.xlu0 %79   ;;  %v86_v29 = vpop.permute.xlu1 %85  }
  0x8d   :  { %82 = vst.msk [vmem:[#allocation0] sm:$0x1] %vm81_vm13, %v80_v28  }
  0x8e   :  { %88 = vst.msk [vmem:[#allocation0] sm:$0x1] %vm87_vm14, %v86_v29  }
  0x90   :  { %v92_v30 = vpop.permute.xlu0 %91  }
  0x91   :  { %94 = vst.msk [vmem:[#allocation0] sm:$0x1] %vm93_vm15, %v92_v30  }
  0x98   :  { %v98_v31 = vld [vmem:[#allocation0] sm:$0x1] }
  0x99   :  { %100 = vst [vmem:[%s208_s1] sm:$0x1] %v98_v31 }

// kernel: encoder_block.3
= control target key start
LH: loop header
LB: loop body
LE: loop exit
PB: predicated region body
PF: predicated region fallthrough
CT: control target
= control target key end

     0   :  { %s932_s12 = smov 0   ;;  %s1074_s0 = inlined_call_operand.vmem [shape: f32[2,16,128], index: 0, kind: input, shape index: {}]   ;;  %s1075_s1 = inlined_call_operand.vmem [shape: bf16[3,128,128], index: 1, kind: input, shape index: {}]   ;;  %s1076_s2 = inlined_call_operand.vmem [shape: f32[2,16,128], index: 2, kind: output, shape index: {0}]   ;;  %s1077_s3 = inlined_call_operand.vmem [shape: f32[2,2,128], index: 3, kind: output, shape index: {1}]  }
   0x1 LB: > { %s695_s13 = sadd.s32 4294967295, %s908_s12   ;;  %p699_p0 = scmp.ge.s32.totalorder %s908_s12, 1  ;;  %s908_s12 = sphi %s932_s12, %s14_s12  }
   0x2   : > { %p140_p1 = scmp.lt.s32.totalorder %s908_s12, 3 }
   0x4   : > { %p141_p2 = pnand %p699_p0, %p140_p1 }
   0x5   : > { %v875_v0 = vld [vmem:[%s1075_s1] sm:$0xff] (!%p141_p2)   ;;  %v910_v1 = vmov (!%p141_p2), 0.0   ;;  %v876_v2 = vld [vmem:[%s1075_s1 + $0x8] sm:$0xff] (!%p141_p2)   ;;  %vm911_vm0 = vmmov (!%p141_p2), 0   ;;  %p168_p3 = scmp.lt.s32.totalorder (!%p141_p2), %s695_s13, 1  ;;  %v877_v3 = vld [vmem:[%s1075_s1 + $0x10] sm:$0xff] (!%p141_p2)  }
   0x6   : > { %144 = sbr.rel (%p141_p2) target bundleno = 303 (0x12f), region = 28  ;;  %819 = vmatprep.subr.bf16.mxu0 (!%p141_p2), %v910_v1  ;;  %799 = vmatprep.subr.bf16.mxu1 (!%p141_p2), %v910_v1  ;;  %vm183_vm1 = vcmask (!%p141_p2), 1040384   ;;  %v883_v4 = vld [vmem:[%s1075_s1 + $0x40] sm:$0xff] (!%p141_p2)   ;;  %v878_v5 = vld [vmem:[%s1075_s1 + $0x18] sm:$0xff] (!%p141_p2)   ;;  %vm184_vm2 = vsmask.f32 (!%p141_p2), 256 }
   0x7   : > { %820 = vmatpush3.bf16.msra.mxu0 (!%p141_p2), %v875_v0  ;;  %835 = vmatprep.mubr.msk.bf16.mxu0 (!%p141_p2), %vm911_vm0, %v910_v1  ;;  %v186_v6 = vld [vmem:[#allocation2] sm:$0x1] (!%p141_p2)  ;;  %vm972_vm3 = vmand (!%p141_p2), %vm183_vm1, %vm184_vm2  ;;  %vm189_vm4 = vsmask.f32 (!%p141_p2), 7938  ;;  %v191_v8 = vld [vmem:[#allocation2 + $0x8] sm:$0x1] (!%p141_p2) }
   0x8   : > { %821 = vmatprep.subr.bf16.mxu0 (!%p141_p2), %v910_v1  ;;  %815 = vmatprep.mubr.msk.bf16.mxu1 (!%p141_p2), %vm911_vm0, %v910_v1  ;;  %v187_v10 = vsel (!%p141_p2), %vm972_vm3, 0, %v186_v6  ;;  %vm190_vm5 = vmand (!%p141_p2), %vm183_vm1, %vm189_vm4  ;;  %v879_v13 = vld [vmem:[%s1075_s1 + $0x20] sm:$0xff] (!%p141_p2)   ;;  %vm202_vm6 = vsmask.f32 (!%p141_p2), 4368  ;;  %vm224_vm7 = vcmask (!%p141_p2), 1043456   ;;  %v887_v20 = vld [vmem:[%s1075_s1 + $0x48] sm:$0xff] (!%p141_p2)  }
   0x9   : > { %800 = vmatpush3.bf16.msra.mxu1 (!%p141_p2), %v883_v4  ;;  %188 = vst [vmem:[#allocation2] sm:$0x1] (!%p141_p2), %v187_v10  ;;  %v192_v14 = vsel (!%p141_p2), %vm190_vm5, 0, %v191_v8  ;;  %vm203_vm8 = vmor (!%p141_p2), %vm184_vm2, %vm202_vm6  ;;  %v889_v23 = vld [vmem:[%s1075_s1 + $0x50] sm:$0xff] (!%p141_p2)   ;;  %v880_v26 = vld [vmem:[%s1075_s1 + $0x28] sm:$0xff] (!%p141_p2)   ;;  %vm491_vm11 = vcmask (!%p141_p2), 1046528  }
   0xa   : > { %801 = vmatprep.subr.bf16.mxu1 (!%p141_p2), %v910_v1  ;;  %193 = vst [vmem:[#allocation2 + $0x8] sm:$0x1] (!%p141_p2), %v192_v14  ;;  %vm225_vm9 = vmand (!%p141_p2), %vm224_vm7, %vm189_vm4  ;;  %v891_v33 = vld [vmem:[%s1075_s1 + $0x58] sm:$0xff] (!%p141_p2)   ;;  %v881_v35 = vld [vmem:[%s1075_s1 + $0x30] sm:$0xff] (!%p141_p2)   ;;  %vm277_vm10 = vsmask.f32 (!%p141_p2), 7424 }
   0xb   : > { %822 = vmatpush3.bf16.msra.mxu0 (!%p141_p2), %v876_v2  ;;  %v893_v36 = vld [vmem:[%s1075_s1 + $0x60] sm:$0xff] (!%p141_p2)   ;;  %v882_v37 = vld [vmem:[%s1075_s1 + $0x38] sm:$0xff] (!%p141_p2)   ;;  %v895_v40 = vld [vmem:[%s1075_s1 + $0x68] sm:$0xff] (!%p141_p2)  }
   0xc   : > { %823 = vmatprep.subr.bf16.mxu0 (!%p141_p2), %v910_v1  ;;  %v886_v43 = vld [vmem:[%s1075_s1 + $0x80] sm:$0xff] (!%p141_p2)   ;;  %v897_v45 = vld [vmem:[%s1075_s1 + $0x70] sm:$0xff] (!%p141_p2)   ;;  %v888_v49 = vld [vmem:[%s1075_s1 + $0x88] sm:$0xff] (!%p141_p2)  }
   0xd   : > { %s1081_s13 = smov (!%p168_p3, %s695_s13), 1  ;;  %802 = vmatpush3.bf16.msra.mxu1 %v887_v20  ;;  %v899_v50 = vld [vmem:[%s1075_s1 + $0x78] sm:$0xff]   ;;  %v890_v53 = vld [vmem:[%s1075_s1 + $0x90] sm:$0xff]   ;;  %v894_v56 = vld [vmem:[%s1075_s1 + $0xa0] sm:$0xff]  }
   0xe   : > { %s768_s20 = sshll.u32 %s1081_s13, 4  ;;  %803 = vmatprep.subr.bf16.mxu1 %v910_v1  ;;  %v892_v55 = vld [vmem:[%s1075_s1 + $0x98] sm:$0xff]   ;;  %v896_v57 = vld [vmem:[%s1075_s1 + $0xa8] sm:$0xff]   ;;  %v898_v60 = vld [vmem:[%s1075_s1 + $0xb0] sm:$0xff]   ;;  %s704_s21 = sshll.u32 %s1081_s13, 1 }
   0xf   : > { %s172_s23 = scalar_lea.vmem %s1074_s0, %s768_s20  ;;  %824 = vmatpush3.bf16.msra.mxu0 %v877_v3  ;;  %v901_v62 = vld [vmem:[%s1075_s1 + $0xb8] sm:$0xff]   ;;  %s177_s19 = scalar_lea.vmem %s1076_s2, %s768_s20 }
  0x10   : > { %v194_v9 = vld [vmem:[%s172_s23] sm:$0xff]  ;;  %825 = vmatprep.subr.bf16.mxu0 %v910_v1  ;;  %v195_v11 = vld [vmem:[%s172_s23 + $0x8] sm:$0xff]  ;;  %s181_s23 = scalar_lea.vmem %s1077_s3, %s704_s21 }
  0x11   : > { %v770_v12 = vpack.c.bf16 %v194_v9, %v194_v9  ;;  %v771_v15 = vpack.c.bf16 %v195_v11, %v195_v11  ;;  %v226_v29 = vld [vmem:[#allocation2] sm:$0xf]  ;;  %v230_v32 = vld [vmem:[#allocation2 + $0x8] sm:$0x1]  ;;  %804 = vmatpush3.bf16.msra.mxu1 %v889_v23 }
  0x12   : > { %805 = vmatprep.subr.bf16.mxu1 %v910_v1 }
  0x13   : > { %v205_v16 = vshrl.u32 %v770_v12, 16  ;;  %v208_v17 = vshll.u32 %v770_v12, 16  ;;  %826 = vmatpush3.bf16.msra.mxu0 %v878_v5  ;;  %v213_v18 = vshrl.u32 %v771_v15, 16  ;;  %v216_v19 = vshll.u32 %v771_v15, 16 }
  0x14   : > { %827 = vmatprep.subr.bf16.mxu0 %v910_v1 }
  0x15   : > { %v207_v21 = vrot.slane %v205_v16, 7  ;;  %v215_v22 = vrot.slane %v213_v18, 7  ;;  %806 = vmatpush3.bf16.msra.mxu1 %v891_v33 }
  0x16   : > { %807 = vmatprep.subr.bf16.mxu1 %v910_v1 }
  0x17   : > { %v210_v24 = vor.u32 %v208_v17, %v207_v21  ;;  %v211_v25 = vrot.slane %v207_v21, 4  ;;  %828 = vmatpush3.bf16.msra.mxu0 %v879_v13  ;;  %v218_v27 = vor.u32 %v216_v19, %v215_v22  ;;  %v220_v28 = vrot.slane %v215_v22, 4 }
  0x18   : > { %829 = vmatprep.subr.bf16.mxu0 %v910_v1 }
  0x19   : > { %v219_v30 = vsel %vm203_vm8, %v211_v25, %v218_v27  ;;  %v227_v31 = vsel %vm225_vm9, %v210_v24, %v226_v29  ;;  %v231_v34 = vsel %vm972_vm3, %v220_v28, %v230_v32  ;;  %808 = vmatpush3.bf16.msra.mxu1 %v893_v36 }
  0x1a   : > { %228 = vst [vmem:[#allocation2] sm:$0xf] %v227_v31  ;;  %229 = vst [vmem:[#allocation2 + $0x4] sm:$0xf] %v219_v30  ;;  %809 = vmatprep.subr.bf16.mxu1 %v910_v1 }
  0x1b   : > { %830 = vmatpush3.bf16.msra.mxu0 %v880_v26  ;;  %232 = vst [vmem:[#allocation2 + $0x8] sm:$0x1] %v231_v34 }
  0x1c   : > { %831 = vmatprep.subr.bf16.mxu0 %v910_v1 }
  0x1d   : > { %810 = vmatpush3.bf16.msra.mxu1 %v895_v40 }
  0x1e   : > { %811 = vmatprep.subr.bf16.mxu1 %v910_v1 }
  0x1f   : > { %832 = vmatpush3.bf16.msra.mxu0 %v881_v35 }
  0x20   : > { %833 = vmatprep.subr.bf16.mxu0 %v910_v1 }
  0x21   : > { %v233_v38 = vld [vmem:[#allocation2] sm:$0xf]  ;;  %v234_v39 = vld [vmem:[#allocation2 + $0x4] sm:$0xf]  ;;  %812 = vmatpush3.bf16.msra.mxu1 %v897_v45 }
  0x22   : > { %v723_v41 = vcombine.low %v233_v38, %v234_v39  ;;  %v900_v42 = vld [vmem:[#allocation2 + $0x8] ss:$0 sps:$4 sm:$0x11]   ;;  %813 = vmatprep.subr.bf16.mxu1 %v910_v1  ;;  %v470_v58 = vld [vmem:[#allocation2] sm:$0xe] }
  0x23   : > { %834 = vmatpush3.bf16.msra.mxu0 %v882_v37  ;;  %v286_v47 = vshll.u32 %v900_v42, 16  ;;  %v757_v59 = vcombine.low %v470_v58, %v234_v39  ;;  %v493_v63 = vrot.slane %v900_v42, 1 }
  0x24   : > { %839 = vmatprep.subr.bf16.mxu0 %v910_v1  ;;  %v281_v44 = vshll.u32 %v723_v41, 16  ;;  %v279_v46 = vshrl.u32 %v723_v41, 16 }
  0x25   : > { %v288_v52 = vrot.slane %v286_v47, 1  ;;  %814 = vmatpush3.bf16.msra.mxu1 %v899_v50  ;;  %v492_v61 = vrot.slane %v757_v59, 1 }
  0x26   : > { %836 = vmatmul.mubr.bf16.vlgmr.msra.gmra.mrb[0].mxu0 %v723_v41  ;;  %v283_v48 = vrot.slane %v281_v44, 1 }
  0x27   : > { %840 = vmatpush3.bf16.msra.mxu0 %v886_v43  ;;  %855 = vmatprep.mubr.msk.bf16.mxu0 %vm911_vm0, %v910_v1  ;;  %v494_v0 = vsel %vm491_vm11, %v492_v61, %v493_v63 }
  0x28   : > { %841 = vmatprep.subr.bf16.mxu0 %v910_v1  ;;  %v284_v51 = vor.u32 %v283_v48, %v279_v46 }
  0x2a   : > { %v289_v54 = vsel %vm277_vm10, %v284_v51, %v288_v52 }
  0x2b   : > { %842 = vmatpush3.bf16.msra.mxu0 %v888_v49  ;;  %816 = vmatmul.mubr.bf16.vlgmr.msra.gmra.mrb[0].mxu1 %v289_v54 }
  0x2c   : > { %843 = vmatprep.subr.bf16.mxu0 %v910_v1 }
  0x2f   : > { %844 = vmatpush3.bf16.msra.mxu0 %v890_v53 }
  0x30   : > { %845 = vmatprep.subr.bf16.mxu0 %v910_v1 }
  0x33   : > { %846 = vmatpush3.bf16.msra.mxu0 %v892_v55 }
  0x34   : > { %847 = vmatprep.subr.bf16.mxu0 %v910_v1 }
  0x37   : > { %848 = vmatpush3.bf16.msra.mxu0 %v894_v56 }
  0x38   : > { %849 = vmatprep.subr.bf16.mxu0 %v910_v1 }
  0x3b   : > { %850 = vmatpush3.bf16.msra.mxu0 %v896_v57 }
  0x3c   : > { %851 = vmatprep.subr.bf16.mxu0 %v910_v1 }
  0x3f   : > { %852 = vmatpush3.bf16.msra.mxu0 %v898_v60 }
  0x40   : > { %853 = vmatprep.subr.bf16.mxu0 %v910_v1 }
  0x43   : > { %854 = vmatpush3.bf16.msra.mxu0 %v901_v62 }
  0x46   : > { %856 = vmatmul.mubr.bf16.vlgmr.msra.gmra.mrb[0].mxu0 %v494_v0 }
  0xfe   : > { %v373_v2 = vpop.f32.mrb[0].mxu1 }
  0xff   : > { %v817_v3 = vpop.f32.mrb[1].mxu1 }
 0x100   : > { %v376_v4 = vpop.f32.mrb[2].mxu1 }
 0x101   : > { %v818_v5 = vpop.f32.mrb[3].mxu1 }
 0x119   : > { %v578_v6 = vpop.f32.mrb[0].mxu0 }
 0x11a   : > { %v859_v7 = vadd.f32 %v578_v6, %v373_v2  ;;  %v857_v8 = vpop.f32.mrb[1].mxu0 }
 0x11b   : > { %v581_v9 = vpop.f32.mrb[2].mxu0 }
 0x11c   : > { %587 = vst [vmem:[%s177_s19] sm:$0xff] %v859_v7  ;;  %v860_v1 = vadd.f32 %v581_v9, %v376_v4  ;;  %v858_v10 = vpop.f32.mrb[3].mxu0  ;;  %v597_v11 = vmul.f32 %v859_v7, %v859_v7 }
 0x11e   : > { %588 = vst [vmem:[%s177_s19 + $0x8] sm:$0xff] %v860_v1  ;;  %v589_v12 = vadd.f32 %v860_v1, %v859_v7  ;;  %v598_v13 = vmul.f32 %v860_v1, %v860_v1 }
 0x120   : > { %v590_v14 = vrot.slane %v589_v12, 4  ;;  %v599_v15 = vadd.f32 %v598_v13, %v597_v11 }
 0x122   : > { %v591_v16 = vadd.f32 %v590_v14, %v589_v12  ;;  %v600_v17 = vrot.slane %v599_v15, 4 }
 0x124   : > { %v592_v18 = vrot.slane %v591_v16, 2  ;;  %v601_v19 = vadd.f32 %v600_v17, %v599_v15 }
 0x126   : > { %v593_v20 = vadd.f32 %v592_v18, %v591_v16  ;;  %v602_v21 = vrot.slane %v601_v19, 2 }
 0x128   : > { %v594_v22 = vrot.slane %v593_v20, 1  ;;  %v603_v23 = vadd.f32 %v602_v21, %v601_v19 }
 0x12a   : > { %v595_v24 = vadd.f32 %v594_v22, %v593_v20  ;;  %v604_v25 = vrot.slane %v603_v23, 1 }
 0x12c   : > { %v605_v26 = vadd.f32 %v604_v25, %v603_v23  ;;  %607 = vst [vmem:[%s181_s23] sm:$0x1] %v595_v24 }
 0x12e   : > { %608 = vst [vmem:[%s181_s23 + $0x1] sm:$0x1] %v605_v26 }
 0x12f PF: > { %s14_s12 = sadd.s32 1, %s908_s12  }
 0x130   : > { %p11_p4 = scmp.ge.s32.totalorder %s14_s12, 4  }
 0x132   :  { %13 = sbr.rel (!%p11_p4) target bundleno = 1 (0x1), region = 72 }

// kernel: encoder_block.5
= control target key start
LH: loop header
LB: loop body
LE: loop exit
PB: predicated region body
PF: predicated region fallthrough
CT: control target
= control target key end

     0   :  { %s372_s15 = smov 0   ;;  %s398_s0 = inlined_call_operand.vmem [shape: f32[2,16,128], index: 0, kind: input, shape index: {}]   ;;  %s399_s1 = inlined_call_operand.vmem [shape: f32[1,128], index: 1, kind: input, shape index: {}]   ;;  %s400_s2 = inlined_call_operand.vmem [shape: f32[1,128], index: 2, kind: input, shape index: {}]   ;;  %s401_s3 = inlined_call_operand.vmem [shape: f32[2,16,128], index: 3, kind: input, shape index: {}]   ;;  %s402_s4 = inlined_call_operand.vmem [shape: f32[2,16,128], index: 4, kind: output, shape index: {}]  }
   0x1 LB: > { %s313_s16 = sadd.s32 4294967295, %s345_s15   ;;  %p317_p0 = scmp.ge.s32.totalorder %s345_s15, 1  ;;  %s345_s15 = sphi %s372_s15, %s14_s15  }
   0x2   : > { %p172_p1 = scmp.lt.s32.totalorder %s345_s15, 3 }
   0x4   : > { %p173_p2 = pnand %p317_p0, %p172_p1 }
   0x5   : > { %p203_p3 = scmp.lt.s32.totalorder (!%p173_p2), %s313_s16, 1  ;;  %v324_v0 = vld [vmem:[%s399_s1] ss:$0 sm:$0xff] (!%p173_p2) }
   0x6   : > { %176 = sbr.rel (%p173_p2) target bundleno = 26 (0x1a), region = 36  ;;  %v325_v1 = vld [vmem:[%s400_s2] ss:$0 sm:$0xff] (!%p173_p2) }
   0xd   : > { %s404_s16 = smov (!%p203_p3, %s313_s16), 1 }
   0xe   : > { %s328_s17 = sshll.u32 %s404_s16, 4 }
   0xf   : > { %s207_s22 = scalar_lea.vmem %s398_s0, %s328_s17  ;;  %s212_s25 = scalar_lea.vmem %s401_s3, %s328_s17 }
  0x10   : > { %v220_v2 = vld [vmem:[%s207_s22] sm:$0xff]  ;;  %v221_v3 = vld [vmem:[%s207_s22 + $0x8] sm:$0xff]  ;;  %s217_s30 = scalar_lea.vmem %s402_s4, %s328_s17 }
  0x11   : > { %v228_v4 = vmul.f32 %v324_v0, %v220_v2  ;;  %v229_v5 = vmul.f32 %v324_v0, %v221_v3  ;;  %v238_v6 = vld [vmem:[%s212_s25] sm:$0xff]  ;;  %v239_v7 = vld [vmem:[%s212_s25 + $0x8] sm:$0xff] }
  0x13   : > { %v236_v8 = vadd.f32 %v325_v1, %v228_v4  ;;  %v237_v9 = vadd.f32 %v325_v1, %v229_v5 }
  0x15   : > { %v240_v10 = vadd.f32 %v238_v6, %v236_v8  ;;  %v241_v11 = vadd.f32 %v239_v7, %v237_v9 }
  0x17   : > { %v242_v12 = vmax.f32 %v240_v10, 0.0  ;;  %v243_v13 = vmax.f32 %v241_v11, 0.0 }
  0x19   : > { %244 = vst [vmem:[%s217_s30] sm:$0xff] %v242_v12  ;;  %245 = vst [vmem:[%s217_s30 + $0x8] sm:$0xff] %v243_v13 }
  0x1a PF: > { %s14_s15 = sadd.s32 1, %s345_s15  }
  0x1b   : > { %p11_p4 = scmp.ge.s32.totalorder %s14_s15, 4  }
  0x1d   :  { %13 = sbr.rel (!%p11_p4) target bundleno = 1 (0x1), region = 69 }

// kernel: encoder_block.4
= control target key start
LH: loop header
LB: loop body
LE: loop exit
PB: predicated region body
PF: predicated region fallthrough
CT: control target
= control target key end

     0   :  { %s1018_s18 = smov 0   ;;  %s1180_s0 = inlined_call_operand.vmem [shape: f32[2,16,128], index: 0, kind: input, shape index: {}]   ;;  %s1181_s1 = inlined_call_operand.vmem [shape: f32[1,128], index: 1, kind: input, shape index: {}]   ;;  %s1182_s2 = inlined_call_operand.vmem [shape: f32[1,128], index: 2, kind: input, shape index: {}]   ;;  %s1183_s3 = inlined_call_operand.vmem [shape: bf16[3,128,128], index: 3, kind: input, shape index: {}]   ;;  %s1184_s4 = inlined_call_operand.vmem [shape: f32[2,16,128], index: 4, kind: output, shape index: {0}]   ;;  %s1185_s5 = inlined_call_operand.vmem [shape: f32[2,2,128], index: 5, kind: output, shape index: {1}]  }
   0x1 LB: > { %s769_s19 = sadd.s32 4294967295, %s984_s18   ;;  %p773_p0 = scmp.ge.s32.totalorder %s984_s18, 1  ;;  %s984_s18 = sphi %s1018_s18, %s16_s18  }
   0x2   : > { %p190_p1 = scmp.lt.s32.totalorder %s984_s18, 3 }
   0x4   : > { %p191_p2 = pnand %p773_p0, %p190_p1 }
   0x5   : > { %v951_v0 = vld [vmem:[%s1183_s3] sm:$0xff] (!%p191_p2)   ;;  %v986_v1 = vmov (!%p191_p2), 0.0   ;;  %v952_v2 = vld [vmem:[%s1183_s3 + $0x8] sm:$0xff] (!%p191_p2)   ;;  %vm987_vm0 = vmmov (!%p191_p2), 0   ;;  %p222_p3 = scmp.lt.s32.totalorder (!%p191_p2), %s769_s19, 1  ;;  %v953_v3 = vld [vmem:[%s1183_s3 + $0x10] sm:$0xff] (!%p191_p2)  }
   0x6   : > { %194 = sbr.rel (%p191_p2) target bundleno = 307 (0x133), region = 36  ;;  %895 = vmatprep.subr.bf16.mxu0 (!%p191_p2), %v986_v1  ;;  %875 = vmatprep.subr.bf16.mxu1 (!%p191_p2), %v986_v1  ;;  %vm239_vm1 = vcmask (!%p191_p2), 1040384   ;;  %v954_v4 = vld [vmem:[%s1183_s3 + $0x18] sm:$0xff] (!%p191_p2)   ;;  %v959_v5 = vld [vmem:[%s1183_s3 + $0x40] sm:$0xff] (!%p191_p2)   ;;  %vm240_vm2 = vsmask.f32 (!%p191_p2), 256 }
   0x7   : > { %896 = vmatpush3.bf16.msra.mxu0 (!%p191_p2), %v951_v0  ;;  %911 = vmatprep.mubr.msk.bf16.mxu0 (!%p191_p2), %vm987_vm0, %v986_v1  ;;  %v779_v6 = vld [vmem:[%s1181_s1] ss:$0 sm:$0xff] (!%p191_p2)  ;;  %vm1065_vm3 = vmand (!%p191_p2), %vm239_vm1, %vm240_vm2  ;;  %vm245_vm4 = vsmask.f32 (!%p191_p2), 7938  ;;  %v247_v10 = vld [vmem:[#allocation2 + $0x8] sm:$0x1] (!%p191_p2) }
   0x8   : > { %897 = vmatprep.subr.bf16.mxu0 (!%p191_p2), %v986_v1  ;;  %891 = vmatprep.mubr.msk.bf16.mxu1 (!%p191_p2), %vm987_vm0, %v986_v1  ;;  %v780_v7 = vld [vmem:[%s1182_s2] ss:$0 sm:$0xff] (!%p191_p2)  ;;  %vm246_vm5 = vmand (!%p191_p2), %vm239_vm1, %vm245_vm4  ;;  %v963_v20 = vld [vmem:[%s1183_s3 + $0x48] sm:$0xff] (!%p191_p2)   ;;  %vm276_vm6 = vsmask.f32 (!%p191_p2), 4368  ;;  %vm298_vm7 = vcmask (!%p191_p2), 1043456  }
   0x9   : > { %876 = vmatpush3.bf16.msra.mxu1 (!%p191_p2), %v959_v5  ;;  %v242_v9 = vld [vmem:[#allocation2] sm:$0x1] (!%p191_p2)  ;;  %v248_v14 = vsel (!%p191_p2), %vm246_vm5, 0, %v247_v10  ;;  %v965_v23 = vld [vmem:[%s1183_s3 + $0x50] sm:$0xff] (!%p191_p2)   ;;  %v956_v24 = vld [vmem:[%s1183_s3 + $0x28] sm:$0xff] (!%p191_p2)   ;;  %vm565_vm11 = vcmask (!%p191_p2), 1046528  }
   0xa   : > { %877 = vmatprep.subr.bf16.mxu1 (!%p191_p2), %v986_v1  ;;  %v243_v11 = vsel (!%p191_p2), %vm1065_vm3, 0, %v242_v9  ;;  %v955_v17 = vld [vmem:[%s1183_s3 + $0x20] sm:$0xff] (!%p191_p2)   ;;  %249 = vst [vmem:[#allocation2 + $0x8] sm:$0x1] (!%p191_p2), %v248_v14  ;;  %v957_v27 = vld [vmem:[%s1183_s3 + $0x30] sm:$0xff] (!%p191_p2)   ;;  %vm1094_vm8 = vmor (!%p191_p2), %vm240_vm2, %vm276_vm6 }
   0xb   : > { %898 = vmatpush3.bf16.msra.mxu0 (!%p191_p2), %v952_v2  ;;  %244 = vst [vmem:[#allocation2] sm:$0x1] (!%p191_p2), %v243_v11  ;;  %v967_v33 = vld [vmem:[%s1183_s3 + $0x58] sm:$0xff] (!%p191_p2)   ;;  %vm1103_vm9 = vmand (!%p191_p2), %vm298_vm7, %vm245_vm4  ;;  %v969_v43 = vld [vmem:[%s1183_s3 + $0x60] sm:$0xff] (!%p191_p2)   ;;  %vm351_vm10 = vsmask.f32 (!%p191_p2), 7424 }
   0xc   : > { %899 = vmatprep.subr.bf16.mxu0 (!%p191_p2), %v986_v1  ;;  %v958_v44 = vld [vmem:[%s1183_s3 + $0x38] sm:$0xff] (!%p191_p2)   ;;  %v971_v48 = vld [vmem:[%s1183_s3 + $0x68] sm:$0xff] (!%p191_p2)   ;;  %v973_v49 = vld [vmem:[%s1183_s3 + $0x70] sm:$0xff] (!%p191_p2)  }
   0xd   : > { %s1193_s19 = smov (!%p222_p3, %s769_s19), 1  ;;  %878 = vmatpush3.bf16.msra.mxu1 %v963_v20  ;;  %v962_v52 = vld [vmem:[%s1183_s3 + $0x80] sm:$0xff]   ;;  %v975_v55 = vld [vmem:[%s1183_s3 + $0x78] sm:$0xff]   ;;  %v964_v59 = vld [vmem:[%s1183_s3 + $0x88] sm:$0xff]  }
   0xe   : > { %s844_s26 = sshll.u32 %s1193_s19, 4  ;;  %879 = vmatprep.subr.bf16.mxu1 %v986_v1  ;;  %v966_v63 = vld [vmem:[%s1183_s3 + $0x90] sm:$0xff]   ;;  %v968_v2 = vld [vmem:[%s1183_s3 + $0x98] sm:$0xff]   ;;  %s778_s10 = sshll.u32 %s1193_s19, 1 }
   0xf   : > { %s226_s8 = scalar_lea.vmem %s1180_s0, %s844_s26  ;;  %900 = vmatpush3.bf16.msra.mxu0 %v953_v3  ;;  %v970_v3 = vld [vmem:[%s1183_s3 + $0xa0] sm:$0xff]   ;;  %v977_v9 = vld [vmem:[%s1183_s3 + $0xb8] sm:$0xff]   ;;  %s231_s9 = scalar_lea.vmem %s1184_s4, %s844_s26 }
  0x10   : > { %901 = vmatprep.subr.bf16.mxu0 %v986_v1  ;;  %v250_v12 = vld [vmem:[%s226_s8] sm:$0xff]  ;;  %v251_v13 = vld [vmem:[%s226_s8 + $0x8] sm:$0xff]  ;;  %s235_s12 = scalar_lea.vmem %s1185_s5, %s778_s10 }
  0x11   : > { %v258_v15 = vmul.f32 %v779_v6, %v250_v12  ;;  %v259_v16 = vmul.f32 %v779_v6, %v251_v13  ;;  %880 = vmatpush3.bf16.msra.mxu1 %v965_v23  ;;  %v304_v38 = vld [vmem:[#allocation2 + $0x8] sm:$0x1] }
  0x12   : > { %v300_v34 = vld [vmem:[#allocation2] sm:$0xf]  ;;  %881 = vmatprep.subr.bf16.mxu1 %v986_v1 }
  0x13   : > { %902 = vmatpush3.bf16.msra.mxu0 %v954_v4  ;;  %v266_v18 = vadd.f32 %v780_v7, %v258_v15  ;;  %v267_v19 = vadd.f32 %v780_v7, %v259_v16  ;;  %v972_v4 = vld [vmem:[%s1183_s3 + $0xa8] sm:$0xff]   ;;  %v974_v7 = vld [vmem:[%s1183_s3 + $0xb0] sm:$0xff]  }
  0x14   : > { %903 = vmatprep.subr.bf16.mxu0 %v986_v1 }
  0x15   : > { %v268_v21 = vmax.f32 %v266_v18, 0.0  ;;  %v269_v22 = vmax.f32 %v267_v19, 0.0  ;;  %882 = vmatpush3.bf16.msra.mxu1 %v967_v33 }
  0x16   : > { %883 = vmatprep.subr.bf16.mxu1 %v986_v1 }
  0x17   : > { %904 = vmatpush3.bf16.msra.mxu0 %v955_v17  ;;  %v846_v25 = vpack.c.bf16 %v268_v21, %v268_v21  ;;  %v847_v26 = vpack.c.bf16 %v269_v22, %v269_v22 }
  0x18   : > { %905 = vmatprep.subr.bf16.mxu0 %v986_v1 }
  0x19   : > { %v279_v29 = vshrl.u32 %v846_v25, 16  ;;  %v282_v30 = vshll.u32 %v846_v25, 16  ;;  %v287_v31 = vshrl.u32 %v847_v26, 16  ;;  %v290_v32 = vshll.u32 %v847_v26, 16  ;;  %884 = vmatpush3.bf16.msra.mxu1 %v969_v43 }
  0x1a   : > { %885 = vmatprep.subr.bf16.mxu1 %v986_v1 }
  0x1b   : > { %906 = vmatpush3.bf16.msra.mxu0 %v956_v24  ;;  %v281_v35 = vrot.slane %v279_v29, 7  ;;  %v289_v36 = vrot.slane %v287_v31, 7 }
  0x1c   : > { %907 = vmatprep.subr.bf16.mxu0 %v986_v1 }
  0x1d   : > { %v284_v39 = vor.u32 %v282_v30, %v281_v35  ;;  %v285_v40 = vrot.slane %v281_v35, 4  ;;  %v292_v41 = vor.u32 %v290_v32, %v289_v36  ;;  %v294_v42 = vrot.slane %v289_v36, 4  ;;  %886 = vmatpush3.bf16.msra.mxu1 %v971_v48 }
  0x1e   : > { %887 = vmatprep.subr.bf16.mxu1 %v986_v1 }
  0x1f   : > { %908 = vmatpush3.bf16.msra.mxu0 %v957_v27  ;;  %v293_v45 = vsel %vm1094_vm8, %v285_v40, %v292_v41  ;;  %v301_v46 = vsel %vm1103_vm9, %v284_v39, %v300_v34  ;;  %v305_v47 = vsel %vm1065_vm3, %v294_v42, %v304_v38 }
  0x20   : > { %909 = vmatprep.subr.bf16.mxu0 %v986_v1  ;;  %302 = vst [vmem:[#allocation2] sm:$0xf] %v301_v46  ;;  %303 = vst [vmem:[#allocation2 + $0x4] sm:$0xf] %v293_v45 }
  0x21   : > { %306 = vst [vmem:[#allocation2 + $0x8] sm:$0x1] %v305_v47  ;;  %888 = vmatpush3.bf16.msra.mxu1 %v973_v49 }
  0x22   : > { %889 = vmatprep.subr.bf16.mxu1 %v986_v1 }
  0x23   : > { %910 = vmatpush3.bf16.msra.mxu0 %v958_v44 }
  0x24   : > { %915 = vmatprep.subr.bf16.mxu0 %v986_v1 }
  0x25   : > { %890 = vmatpush3.bf16.msra.mxu1 %v975_v55 }
  0x27   : > { %v307_v50 = vld [vmem:[#allocation2] sm:$0xf]  ;;  %v308_v51 = vld [vmem:[#allocation2 + $0x4] sm:$0xf] }
  0x28   : > { %v799_v53 = vcombine.low %v307_v50, %v308_v51  ;;  %v976_v54 = vld [vmem:[#allocation2 + $0x8] ss:$0 sps:$4 sm:$0x11]   ;;  %v544_v5 = vld [vmem:[#allocation2] sm:$0xe] }
  0x29   : > { %v360_v58 = vshll.u32 %v976_v54, 16  ;;  %v833_v6 = vcombine.low %v544_v5, %v308_v51  ;;  %v567_v10 = vrot.slane %v976_v54, 1 }
  0x2a   : > { %v355_v56 = vshll.u32 %v799_v53, 16  ;;  %912 = vmatmul.mubr.bf16.vlgmr.msra.gmra.mrb[0].mxu0 %v799_v53  ;;  %v353_v57 = vshrl.u32 %v799_v53, 16 }
  0x2b   : > { %916 = vmatpush3.bf16.msra.mxu0 %v962_v52  ;;  %931 = vmatprep.mubr.msk.bf16.mxu0 %vm987_vm0, %v986_v1  ;;  %v362_v61 = vrot.slane %v360_v58, 1  ;;  %v566_v8 = vrot.slane %v833_v6, 1 }
  0x2c   : > { %917 = vmatprep.subr.bf16.mxu0 %v986_v1  ;;  %v357_v60 = vrot.slane %v355_v56, 1 }
  0x2d   : > { %v568_v11 = vsel %vm565_vm11, %v566_v8, %v567_v10 }
  0x2e   : > { %v358_v62 = vor.u32 %v357_v60, %v353_v57 }
  0x2f   : > { %918 = vmatpush3.bf16.msra.mxu0 %v964_v59 }
  0x30   : > { %919 = vmatprep.subr.bf16.mxu0 %v986_v1  ;;  %v363_v0 = vsel %vm351_vm10, %v358_v62, %v362_v61 }
  0x31   : > { %892 = vmatmul.mubr.bf16.vlgmr.msra.gmra.mrb[0].mxu1 %v363_v0 }
  0x33   : > { %920 = vmatpush3.bf16.msra.mxu0 %v966_v63 }
  0x34   : > { %921 = vmatprep.subr.bf16.mxu0 %v986_v1 }
  0x37   : > { %922 = vmatpush3.bf16.msra.mxu0 %v968_v2 }
  0x38   : > { %923 = vmatprep.subr.bf16.mxu0 %v986_v1 }
  0x3b   : > { %924 = vmatpush3.bf16.msra.mxu0 %v970_v3 }
  0x3c   : > { %925 = vmatprep.subr.bf16.mxu0 %v986_v1 }
  0x3f   : > { %926 = vmatpush3.bf16.msra.mxu0 %v972_v4 }
  0x40   : > { %927 = vmatprep.subr.bf16.mxu0 %v986_v1 }
  0x43   : > { %928 = vmatpush3.bf16.msra.mxu0 %v974_v7 }
  0x44   : > { %929 = vmatprep.subr.bf16.mxu0 %v986_v1 }
  0x47   : > { %930 = vmatpush3.bf16.msra.mxu0 %v977_v9 }
  0x4a   : > { %932 = vmatmul.mubr.bf16.vlgmr.msra.gmra.mrb[0].mxu0 %v568_v11 }
 0x104   : > { %v447_v12 = vpop.f32.mrb[0].mxu1 }
 0x105   : > { %v893_v13 = vpop.f32.mrb[1].mxu1 }
 0x106   : > { %v450_v14 = vpop.f32.mrb[2].mxu1 }
 0x107   : > { %v894_v15 = vpop.f32.mrb[3].mxu1 }
 0x11d   : > { %v652_v16 = vpop.f32.mrb[0].mxu0 }
 0x11e   : > { %v935_v17 = vadd.f32 %v652_v16, %v447_v12  ;;  %v933_v18 = vpop.f32.mrb[1].mxu0 }
 0x11f   : > { %v655_v19 = vpop.f32.mrb[2].mxu0 }
 0x120   : > { %661 = vst [vmem:[%s231_s9] sm:$0xff] %v935_v17  ;;  %v936_v1 = vadd.f32 %v655_v19, %v450_v14  ;;  %v934_v20 = vpop.f32.mrb[3].mxu0  ;;  %v671_v21 = vmul.f32 %v935_v17, %v935_v17 }
 0x122   : > { %662 = vst [vmem:[%s231_s9 + $0x8] sm:$0xff] %v936_v1  ;;  %v663_v22 = vadd.f32 %v936_v1, %v935_v17  ;;  %v672_v23 = vmul.f32 %v936_v1, %v936_v1 }
 0x124   : > { %v664_v24 = vrot.slane %v663_v22, 4  ;;  %v673_v25 = vadd.f32 %v672_v23, %v671_v21 }
 0x126   : > { %v665_v26 = vadd.f32 %v664_v24, %v663_v22  ;;  %v674_v27 = vrot.slane %v673_v25, 4 }
 0x128   : > { %v666_v28 = vrot.slane %v665_v26, 2  ;;  %v675_v29 = vadd.f32 %v674_v27, %v673_v25 }
 0x12a   : > { %v667_v30 = vadd.f32 %v666_v28, %v665_v26  ;;  %v676_v31 = vrot.slane %v675_v29, 2 }
 0x12c   : > { %v668_v32 = vrot.slane %v667_v30, 1  ;;  %v677_v33 = vadd.f32 %v676_v31, %v675_v29 }
 0x12e   : > { %v669_v34 = vadd.f32 %v668_v32, %v667_v30  ;;  %v678_v35 = vrot.slane %v677_v33, 1 }
 0x130   : > { %v679_v36 = vadd.f32 %v678_v35, %v677_v33  ;;  %681 = vst [vmem:[%s235_s12] sm:$0x1] %v669_v34 }
 0x132   : > { %682 = vst [vmem:[%s235_s12 + $0x1] sm:$0x1] %v679_v36 }
 0x133 PF: > { %s16_s18 = sadd.s32 1, %s984_s18  }
 0x134   : > { %p13_p4 = scmp.ge.s32.totalorder %s16_s18, 4  }
 0x136   :  { %15 = sbr.rel (!%p13_p4) target bundleno = 1 (0x1), region = 80 }

</bundles_post_ra>
